<compile_context>
chip_gen: v7x
topology: tpu7x:2x2x1
jax: 0.10.0
libtpu: 0.0.40
codegen_flags: <defaults>
</compile_context>

<pallas_src>
import jax
import jax.numpy as jnp
from jax.experimental import pallas as pl
from jax.experimental.pallas import tpu as pltpu

BN_EPS = 1e-5
LANES = 128
SUBLANES = 8


def conv_bn_kernel(p_ref, x_ref, y_ref):
    # p_ref: SMEM f32[2] = [scale, offset]   (conv weight + BN fully folded)
    # x_ref: VMEM (R, 128) lane-dense slab holding the zero-padded input
    # y_ref: VMEM (R, 128) lane-dense output slab
    scale = p_ref[0]
    offset = p_ref[1]
    # One full-width FMA + one unmasked 128-lane store per row.
    y_ref[...] = x_ref[...] * scale + offset


def model_forward(x, conv_w, gamma, beta):
    """x: (1, 1, D, H, W); returns (y, z), each (1, 1, D+4, H+4, W+4)."""
    N, C, D, H, W = x.shape
    assert N == 1 and C == 1, "this synthetic model has N=C=1"
    pad = 2
    Do, Ho, Wo = D + 2 * pad, H + 2 * pad, W + 2 * pad
    n_total = Do * Ho * Wo

    # Round the slab row count up to a full (8,128) tile.
    rows = pl.cdiv(n_total, LANES)
    R = ((rows + SUBLANES - 1) // SUBLANES) * SUBLANES
    slab_elems = R * LANES

    xf = x.astype(jnp.float32)
    w = conv_w.reshape(()).astype(jnp.float32)
    g = gamma.reshape(()).astype(jnp.float32)
    b = beta.reshape(()).astype(jnp.float32)

    # ---- Hoisted scalar statistics / fold (tiny, trivially fused by XLA) ----
    # Batch stats of conv_out = w * zero_pad(x) over the padded volume:
    # padded zeros add nothing to sum / sum-of-squares; divide by n = Do*Ho*Wo.
    inv_n = 1.0 / float(n_total)
    sx = jnp.sum(xf)
    sxx = jnp.sum(xf * xf)
    mean = w * sx * inv_n
    var = (w * w) * sxx * inv_n - mean * mean          # biased variance
    inv_std = jax.lax.rsqrt(var + BN_EPS)
    scale = w * g * inv_std
    offset = b - mean * g * inv_std
    params = jnp.stack([scale, offset])                # SMEM f32[2]

    # ---- Pre-scatter the padded input into a lane-dense (R,128) slab ----
    x_pad_flat = jnp.pad(
        xf, ((0, 0), (0, 0), (pad, pad), (pad, pad), (pad, pad))
    ).reshape(-1)
    slab_in = jnp.pad(x_pad_flat, (0, slab_elems - n_total)).reshape(R, LANES)

    y_slab = pl.pallas_call(
        conv_bn_kernel,
        out_shape=jax.ShapeDtypeStruct((R, LANES), jnp.float32),
        in_specs=[
            pl.BlockSpec(memory_space=pltpu.MemorySpace.SMEM),   # [scale, offset]
            pl.BlockSpec(memory_space=pltpu.MemorySpace.VMEM),   # padded-input slab
        ],
        out_specs=pl.BlockSpec(memory_space=pltpu.MemorySpace.VMEM),
        cost_estimate=pl.CostEstimate(
            flops=2 * slab_elems,
            transcendentals=0,
            bytes_accessed=4 * (2 * slab_elems + 2),
        ),
    )(params, slab_in)

    y = y_slab.reshape(-1)[:n_total].reshape(N, C, Do, Ho, Wo)
    # forward calls self.b(self.a(x)) twice -> numerically identical outputs.
    return y, y


if __name__ == "__main__":
    key = jax.random.PRNGKey(0)
    kx, kw = jax.random.split(key)

    # input matching the PyTorch module: torch.randn(1, 1, 1, 5, 5)
    x = jax.random.normal(kx, (1, 1, 1, 5, 5), dtype=jnp.float32)

    # Conv3d(1,1,1) weight: fan_in = 1 -> kaiming-uniform bound = 1
    conv_w = jax.random.uniform(kw, (1, 1, 1, 1, 1), minval=-1.0, maxval=1.0,
                                dtype=jnp.float32)
    # BatchNorm3d(1, affine=True) default params
    gamma = jnp.ones((1,), dtype=jnp.float32)
    beta = jnp.zeros((1,), dtype=jnp.float32)

    y, z = model_forward(x, conv_w, gamma, beta)
    jax.block_until_ready((y, z))

    assert y.shape == (1, 1, 5, 9, 9) and z.shape == (1, 1, 5, 9, 9)

    # Pure-jnp reference (same math as the PyTorch module in training mode).
    a = jnp.pad(x, ((0, 0), (0, 0), (2, 2), (2, 2), (2, 2))) * conv_w.reshape(())
    mean = jnp.mean(a)
    var = jnp.mean((a - mean) ** 2)
    ref = (a - mean) * jax.lax.rsqrt(var + BN_EPS) * gamma.reshape(()) + beta.reshape(())
    assert jnp.allclose(y, ref, atol=1e-3, rtol=1e-3)
    assert jnp.allclose(z, ref, atol=1e-3, rtol=1e-3)

    print("KERNEL_OK")
</pallas_src>

<mosaic_0001>
module attributes {stable_mosaic.version = 11 : i64} {
  func.func @conv_bn_kernel(%arg0: memref<2xf32, #tpu.memory_space<smem>>, %arg1: memref<8x128xf32, #tpu.memory_space<vmem>>, %arg2: memref<8x128xf32, #tpu.memory_space<vmem>>) attributes {dimension_semantics = [], scalar_prefetch = 0 : i64, scratch_operands = 0 : i64, tpu.core_type = #tpu.core_type<tc>} {
    %c0 = arith.constant 0 : index
    %0 = memref.load %arg0[%c0] : memref<2xf32, #tpu.memory_space<smem>>
    %c1 = arith.constant 1 : index
    %1 = memref.load %arg0[%c1] : memref<2xf32, #tpu.memory_space<smem>>
    %c0_0 = arith.constant 0 : index
    %c0_1 = arith.constant 0 : index
    %2 = vector.load %arg1[%c0_0, %c0_1] : memref<8x128xf32, #tpu.memory_space<vmem>>, vector<8x128xf32>
    %3 = vector.broadcast %0 : f32 to vector<8x128xf32>
    %4 = arith.mulf %2, %3 : vector<8x128xf32>
    %5 = vector.broadcast %1 : f32 to vector<8x128xf32>
    %6 = arith.addf %4, %5 : vector<8x128xf32>
    %c0_2 = arith.constant 0 : index
    %c0_3 = arith.constant 0 : index
    %7 = vector.load %arg2[%c0_2, %c0_3] : memref<8x128xf32, #tpu.memory_space<vmem>>, vector<8x128xf32>
    tpu.vector_store %arg2[%c0_2, %c0_3], %6 {strides = array<i32>} : memref<8x128xf32, #tpu.memory_space<vmem>>, vector<8x128xf32>,
    return
  }
}

</mosaic_0001>

<bundles_post_ra>
// kernel: tpu_custom_call.1
= control target key start
LH: loop header
LB: loop body
LE: loop exit
PB: predicated region body
PF: predicated region fallthrough
CT: control target
= control target key end

     0   :  { %7 = vsyncpa [#allocation5], 0  ;;  %s177_s0 = inlined_call_operand.hbm [shape: f32[2], index: 0, kind: input, shape index: {}]   ;;  %s178_s1 = inlined_call_operand.hbm [shape: f32[8,128], index: 1, kind: input, shape index: {}]   ;;  %s179_s2 = inlined_call_operand.hbm [shape: f32[8,128], index: 2, kind: output, shape index: {}]  }
   0x1   :  { %8 = vsyncpa [#allocation3], 0 }
   0x2   :  { %9 = vsyncpa [#allocation4], 0  ;;  %s63_s11 = scalar_lea.hbm %s177_s0, 16 }
   0x3   :  { %p64_p0 = scmp.ne.s32.totalorder %s177_s0, %s63_s11  ;;  %p67_p1 = scmp.lt.u32.totalorder %s63_s11, %s177_s0 }
   0x5   :  { %p69_p2 = pnand %p67_p1, %p64_p0 }
   0x7   :  { %72 = shalt.err (!%p69_p2)
}
   0x8   :  { %s123_s16 = smov [#allocation2]   ;;  %s124_s19 = smov [#allocation6]  }
   0x9   :  { %17 = dma.hbm_to_smem %s177_s0, 16, %s123_s16, [#allocation5]  }
   0xa   :  { %s24_s20 = sshll.u32 %s124_s19, 4  ;;  %s73_s23 = scalar_lea.hbm %s178_s1, 128  ;;  %s25_s20 = int_to_ptr.vmem [resolvable:$true] %s24_s20 }
   0xb   :  { %p74_p3 = scmp.ne.s32.totalorder %s178_s1, %s73_s23  ;;  %p77_p4 = scmp.lt.u32.totalorder %s73_s23, %s178_s1 }
   0xd   :  { %p79_p5 = pnand %p77_p4, %p74_p3 }
   0xf   :  { %82 = shalt.err (!%p79_p5)
}
  0x10   :  { %s83_s28 = scalar_lea.vmem %s25_s20, 128  ;;  %p88_p7 = scmp.lt.s32.totalorder %s25_s20, %s25_s20 }
  0x11   :  { %p84_p6 = scmp.ne.s32.totalorder %s25_s20, %s83_s28  ;;  %p89_p8 = scmp.lt.s32.totalorder %s83_s28, %s83_s28 }
  0x13   :  { %p90_p9 = por %p89_p8, %p88_p7 }
  0x15   :  { %p91_p10 = pnand %p90_p9, %p84_p6 }
  0x17   :  { %94 = shalt.err (!%p91_p10)
}
  0x18   :  { %27 = dma.hbm_to_vmem [thread:$0]  %s178_s1, 128, %s25_s20, [#allocation3]  }
  0x19   :  { %117 = dma.done.wait [#allocation5], 16  }
  0x1a   :  { %118 = vsyncadd [#allocation5], 4294967280 }
  0x1b   :  { %119 = dma.done.wait [#allocation3], 128  }
  0x1c   :  { %120 = vsyncadd [#allocation3], 4294967168 }
  0x1d   :  { %34 = sfence }
  0x1e   :  { %s35_s30 = sld [smem:[#allocation2]]  ;;  %s59_s3 = sld [smem:[#allocation2 + $0x1]]  ;;  %v37_v0 = vld [vmem:[#allocation6] sm:$0xff] }
  0x1f   :  { %s125_s4 = smov [#allocation7]  }
  0x20   :  { %s49_s5 = sshll.u32 %s125_s4, 4  ;;  %s50_s5 = int_to_ptr.vmem [resolvable:$true] %s49_s5 }
  0x21   :  { %s95_s6 = scalar_lea.vmem %s50_s5, 128  ;;  %p100_p12 = scmp.lt.s32.totalorder %s50_s5, %s50_s5 }
  0x22   :  { %p96_p11 = scmp.ne.s32.totalorder %s50_s5, %s95_s6  ;;  %p101_p13 = scmp.lt.s32.totalorder %s95_s6, %s95_s6 }
  0x24   :  { %v38_v1 = vstv %s35_s30  ;;  %v40_v2 = vstv %s59_s3  ;;  %p102_p0 = por %p101_p13, %p100_p12 }
  0x25   :  { %v39_v3 = vmul.f32 %v38_v1, %v37_v0 }
  0x26   :  { %p103_p1 = pnand %p102_p0, %p96_p11 }
  0x27   :  { %v41_v4 = vadd.f32 %v40_v2, %v39_v3 }
  0x29   :  { %42 = vst [vmem:[#allocation7] sm:$0xff] %v41_v4 }
  0x2a   :  { %106 = shalt.err (!%p103_p1)
}
  0x2b   :  { %s107_s8 = scalar_lea.hbm %s179_s2, 128 }
  0x2c   :  { %p108_p2 = scmp.ne.s32.totalorder %s179_s2, %s107_s8  ;;  %p111_p3 = scmp.lt.u32.totalorder %s107_s8, %s179_s2 }
  0x2e   :  { %p113_p4 = pnand %p111_p3, %p108_p2 }
  0x30   :  { %116 = shalt.err (!%p113_p4)
}
  0x31   :  { %52 = dma.vmem_to_hbm [thread:$0]  %s50_s5, 128, %s179_s2, [#allocation4]  }
  0x32   :  { %121 = dma.done.wait [#allocation4], 128  }
  0x33   :  { %122 = vsyncadd [#allocation4], 4294967168 }
  0x34   :  { %56 = vsyncpa [#allocation3], 1 }
  0x35   :  { %57 = vsyncpa [#allocation4], 1 }
  0x36   :  { %58 = vsyncpa [#allocation5], 1 }

</bundles_post_ra>
